<compile_context>
chip_gen: v6e
topology: v6e:2x2x1
jax: 0.10.0
libtpu: 0.0.40
codegen_flags: <defaults>
</compile_context>

<pallas_src>
import functools
import re

import jax
import jax.numpy as jnp
from jax.experimental import pallas as pl
from jax.experimental.pallas import tpu as pltpu


# ----------------------------------------------------------------------------
# Pallas kernel: per (branch*batch*head, j-tile) triangle attention
#   s[j,i,k] = sum_d q[j,d,i] * k[j,d,k] + bias[i,k]
#   A = softmax_k(s);  out[j,d,i] = sum_k A[j,i,k] * v[j,d,k]
# ----------------------------------------------------------------------------
def _triangle_attn_kernel(q_ref, k_ref, v_ref, bias_ref, o_ref, *, f32_softmax):
    q = q_ref[0]            # (Tj, D, Ni)  bf16  (lane-dense)
    k = k_ref[0]            # (Tj, D, Nk)  bf16
    v = v_ref[0]            # (Tj, D, Nk)  bf16
    b = bias_ref[0]         # (Ni, Nk)     f32

    # QK on the MXU: bf16 operands (transposed LHS), f32 accumulation.
    s = jnp.einsum('jdi,jdk->jik', q, k, preferred_element_type=jnp.float32)
    s = s + b[None, :, :]                               # (Tj, Ni, Nk) f32

    m = jnp.max(s, axis=-1, keepdims=True)              # f32 row max
    if f32_softmax:
        # v5e: no bf16 VPU/EUP — keep the elementwise softmax path in f32.
        p = jnp.exp(s - m)                              # (Tj, Ni, Nk) f32
        l = jnp.sum(p, axis=-1)                         # (Tj, Ni) f32
        p_av = p.astype(v.dtype)
    else:
        # v6e/v7x: bf16 exp on the EUP + bf16 AV operand; denominator accumulates f32.
        p_av = jnp.exp((s - m).astype(jnp.bfloat16))    # (Tj, Ni, Nk) bf16
        l = jnp.sum(p_av, axis=-1, dtype=jnp.float32)   # (Tj, Ni) f32

    # A @ V with lane-dense output (last dim = Ni), bf16 operands, f32 accumulation.
    av = jnp.einsum('jdk,jik->jdi', v, p_av, preferred_element_type=jnp.float32)
    inv_l = pl.reciprocal(l, approx=True)               # EUP slot, ~free
    o_ref[0] = (av * inv_l[:, None, :]).astype(o_ref.dtype)


def _tpu_generation():
    """Best-effort TPU generation from device_kind; defaults to 6 if unknown."""
    try:
        kind = jax.devices()[0].device_kind
    except Exception:
        return 6
    m = re.search(r'(\d+)', kind)
    return int(m.group(1)) if m else 6


def _pick_j_tile(n, d, budget):
    """Largest j-tile whose per-step working set (double-buffered blocks + in-kernel
    temporaries) fits the generation-aware VMEM budget. Falls back to tj=1 (never n)."""
    lane = max(-(-n // 128) * 128, 128)      # minor-axis lane padding
    d_bf16 = max(-(-d // 16) * 16, 16)       # bf16 sublane padding of D
    n_f32 = max(-(-n // 8) * 8, 8)           # f32 sublane padding of Ni
    bias_blk = n_f32 * lane * 4
    for tj in (512, 256, 128, 64, 32, 16, 8, 4, 2, 1):
        if n % tj:
            continue
        qkvo_blk = 4 * tj * d_bf16 * lane * 2          # q, k, v, o blocks (bf16)
        scores = 12 * tj * n_f32 * lane                # s (f32) + p (f32/bf16) + slack
        if 2 * (qkvo_blk + bias_blk) + scores <= budget:
            return tj
    return 1


def triangle_attention_pallas(q, k, v, bias):
    """q, k, v: (G, Nj, D, N) bf16; bias: (G, Ni, Nk) f32.
    Returns o: (G, Nj, D, Ni) bf16 with o[g,j,:,i] = softmax_k(q_j^T k_j + b)[i] @ v_j^T."""
    G, N, D, _ = q.shape

    gen = _tpu_generation()
    if gen >= 7:                                   # v7x: 64 MiB VMEM per TensorCore
        budget, vmem_limit = 36 << 20, 48 << 20
    else:                                          # v5e / v6e: 128 MiB VMEM
        budget, vmem_limit = 88 << 20, 108 << 20
    f32_softmax = gen < 6                          # v5e has no bf16 VPU/EUP

    tj = _pick_j_tile(N, D, budget)
    grid = (G, N // tj)

    cost = pl.CostEstimate(
        flops=4 * G * N * N * N * D,
        transcendentals=G * N * N * N,
        bytes_accessed=8 * G * N * N * D + 4 * G * N * N,
    )

    kernel = functools.partial(_triangle_attn_kernel, f32_softmax=f32_softmax)

    return pl.pallas_call(
        kernel,
        out_shape=jax.ShapeDtypeStruct((G, N, D, N), jnp.bfloat16),
        grid_spec=pltpu.PrefetchScalarGridSpec(
            num_scalar_prefetch=0,
            grid=grid,
            in_specs=[
                pl.BlockSpec((1, tj, D, N), lambda g, jt: (g, jt, 0, 0)),
                pl.BlockSpec((1, tj, D, N), lambda g, jt: (g, jt, 0, 0)),
                pl.BlockSpec((1, tj, D, N), lambda g, jt: (g, jt, 0, 0)),
                pl.BlockSpec((1, N, N), lambda g, jt: (g, 0, 0)),   # j-invariant bias
            ],
            out_specs=pl.BlockSpec((1, tj, D, N), lambda g, jt: (g, jt, 0, 0)),
        ),
        compiler_params=pltpu.CompilerParams(
            # Megacore split stays on the G axis; the jt loop is sequential per core so
            # the resident bias block is fetched once per g.
            dimension_semantics=("parallel", "arbitrary"),
            vmem_limit_bytes=vmem_limit,
        ),
        cost_estimate=cost,
    )(q, k, v, bias)


# ----------------------------------------------------------------------------
# Parameters (deterministic init; shapes mirror the PyTorch module)
# ----------------------------------------------------------------------------
def init_params(key, edge_width, num_heads):
    C, H = edge_width, num_heads
    ks = jax.random.split(key, 10)

    def lin(kw, kb, fan_in, shape_w, shape_b):
        bound = 1.0 / jnp.sqrt(fan_in)
        w = jax.random.uniform(kw, shape_w, jnp.float32, -bound, bound)
        b = jax.random.uniform(kb, shape_b, jnp.float32, -bound, bound)
        return w, b

    p = {}
    p['ln_w'] = jnp.ones((C,), jnp.float32)
    p['ln_b'] = jnp.zeros((C,), jnp.float32)
    p['W_qkv_in'],  p['b_qkv_in']  = lin(ks[0], ks[1], C,     (3 * C, C), (3 * C,))
    p['W_e_in'],    p['b_e_in']    = lin(ks[2], ks[3], C,     (H, C),     (H,))
    p['W_qkv_out'], p['b_qkv_out'] = lin(ks[4], ks[5], C,     (3 * C, C), (3 * C,))
    p['W_e_out'],   p['b_e_out']   = lin(ks[6], ks[7], C,     (H, C),     (H,))
    p['W_o'],       p['b_o']       = lin(ks[8], ks[9], 2 * C, (C, 2 * C), (C,))
    return p


# ----------------------------------------------------------------------------
# Forward pass (projections are JAX glue producing the kernel layout directly)
# ----------------------------------------------------------------------------
def triangle_attention_ungated(e, mask, params, num_heads):
    B, N, _, C = e.shape
    H = num_heads
    D = C // H
    scale = D ** (-0.5)
    bf16 = jnp.bfloat16

    # LayerNorm over channels (eps = 1e-5, nn.LayerNorm default)
    mu = jnp.mean(e, axis=-1, keepdims=True)
    var = jnp.mean((e - mu) ** 2, axis=-1, keepdims=True)
    e_ln = (e - mu) * jax.lax.rsqrt(var + 1e-5) * params['ln_w'] + params['ln_b']

    def split_qkv(W, bvec):
        # torch .view(B,N,N,D,H): projection channel c -> (d, h) with h fastest.
        Wq, Wk, Wv = W[:C], W[C:2 * C], W[2 * C:]
        bq, bk, bv = bvec[:C], bvec[C:2 * C], bvec[2 * C:]
        r = lambda w: w.reshape(D, H, C)
        rb = lambda x: x.reshape(D, H).T             # (H, D)
        # fold the 1/sqrt(D) attention scale into the Q projection (free)
        return r(Wq) * scale, rb(bq) * scale, r(Wk), rb(bk), r(Wv), rb(bv)

    def make_branch(branch):
        """Build q/k/v/bias directly in kernel layout (lane-dense, no HBM transposes)."""
        if branch == 'in':
            Wq, bq, Wk, bk, Wv, bv = split_qkv(params['W_qkv_in'], params['b_qkv_in'])
            We, be = params['W_e_in'], params['b_e_in']
            # q[b,h,j,d,i] = Q_in[b,i,j,d,h];  k/v[b,h,j,d,k] = K_in[b,j,k,d,h]
            q = jnp.einsum('bijc,dhc->bhjdi', e_ln, Wq) + bq[None, :, None, :, None]
            k = jnp.einsum('bjkc,dhc->bhjdk', e_ln, Wk) + bk[None, :, None, :, None]
            v = jnp.einsum('bjkc,dhc->bhjdk', e_ln, Wv) + bv[None, :, None, :, None]
            bias = (jnp.einsum('bikc,hc->bhik', e_ln, We)
                    + be[None, :, None, None]
                    + jnp.transpose(mask, (0, 3, 1, 2)))
        else:
            Wq, bq, Wk, bk, Wv, bv = split_qkv(params['W_qkv_out'], params['b_qkv_out'])
            We, be = params['W_e_out'], params['b_e_out']
            # q[b,h,j,d,i] = Q_out[b,i,j,d,h];  k/v[b,h,j,d,k] = K_out[b,k,j,d,h]
            q = jnp.einsum('bijc,dhc->bhjdi', e_ln, Wq) + bq[None, :, None, :, None]
            k = jnp.einsum('bkjc,dhc->bhjdk', e_ln, Wk) + bk[None, :, None, :, None]
            v = jnp.einsum('bkjc,dhc->bhjdk', e_ln, Wv) + bv[None, :, None, :, None]
            bias = (jnp.einsum('bkic,hc->bhik', e_ln, We)
                    + be[None, :, None, None]
                    + jnp.transpose(mask, (0, 3, 2, 1)))
        flat = lambda x: x.reshape((B * H,) + x.shape[2:])
        return (flat(q).astype(bf16), flat(k).astype(bf16), flat(v).astype(bf16),
                flat(bias).astype(jnp.float32))

    # Single pallas_call over both branches: stack 'in' and 'out' along the G axis.
    q_i, k_i, v_i, b_i = make_branch('in')
    q_o, k_o, v_o, b_o = make_branch('out')
    q = jnp.concatenate([q_i, q_o], axis=0)
    k = jnp.concatenate([k_i, k_o], axis=0)
    v = jnp.concatenate([v_i, v_o], axis=0)
    bias = jnp.concatenate([b_i, b_o], axis=0)

    o = triangle_attention_pallas(q, k, v, bias)        # (2*B*H, Nj, D, Ni)
    o = o.reshape(2, B, H, N, D, N)                     # o[s,b,h,j,d,i] = Va_s[b,i,j,d,h]

    # Final projection consumes the kernel layout directly.  torch concatenates
    # Va_in / Va_out along the head axis before flattening, so lin_O's input channel
    # index is (d, s, h) with s = branch (in | out) and h fastest.
    Wo = params['W_o'].reshape(C, D, 2, H)
    out = jnp.einsum('sbhjdi,cdsh->bijc', o, Wo) + params['b_o']
    return out


# ----------------------------------------------------------------------------
# Pure-JAX reference mirroring the PyTorch forward (for correctness check)
# ----------------------------------------------------------------------------
def triangle_attention_reference(e, mask, params, num_heads):
    B, N, _, C = e.shape
    H = num_heads
    D = C // H
    scale = D ** (-0.5)
    mu = jnp.mean(e, axis=-1, keepdims=True)
    var = jnp.mean((e - mu) ** 2, axis=-1, keepdims=True)
    e_ln = (e - mu) / jnp.sqrt(var + 1e-5) * params['ln_w'] + params['ln_b']

    qkv_in = e_ln @ params['W_qkv_in'].T + params['b_qkv_in']
    Q_in, K_in, V_in = jnp.split(qkv_in, 3, axis=-1)
    E_in = (e_ln @ params['W_e_in'].T + params['b_e_in'])[:, :, None, :, :]
    Q_in = Q_in.reshape(B, N, N, D, H) * scale
    K_in = K_in.reshape(B, N, N, D, H)
    V_in = V_in.reshape(B, N, N, D, H)
    H_in = jnp.einsum('bijdh,bjkdh->bijkh', Q_in, K_in) + E_in
    A_in = jax.nn.softmax(H_in + mask[:, :, None, :, :], axis=3)
    Va_in = jnp.einsum('bijkh,bjkdh->bijdh', A_in, V_in)

    qkv_out = e_ln @ params['W_qkv_out'].T + params['b_qkv_out']
    Q_out, K_out, V_out = jnp.split(qkv_out, 3, axis=-1)
    E_out = (e_ln @ params['W_e_out'].T + params['b_e_out'])[:, :, :, None, :]
    Q_out = Q_out.reshape(B, N, N, D, H) * scale
    K_out = K_out.reshape(B, N, N, D, H)
    V_out = V_out.reshape(B, N, N, D, H)
    H_out = jnp.einsum('bijdh,bkjdh->bkijh', Q_out, K_out) + E_out
    A_out = jax.nn.softmax(H_out + mask[:, :, :, None, :], axis=1)
    Va_out = jnp.einsum('bkijh,bkjdh->bijdh', A_out, V_out)

    Va = jnp.concatenate([Va_in, Va_out], axis=-1).reshape(B, N, N, 2 * C)
    return Va @ params['W_o'].T + params['b_o']


if __name__ == "__main__":
    B, N, C, H = 2, 8, 32, 4   # batch, num_edges (nodes), edge_width, num_heads

    key = jax.random.PRNGKey(0)
    k_e, k_m, k_p = jax.random.split(key, 3)
    e = jax.random.normal(k_e, (B, N, N, C), jnp.float32)
    mask = jnp.where(jax.random.uniform(k_m, (B, N, N, H)) < 0.9, 0.0, -1e9)
    mask = mask.astype(jnp.float32)
    params = init_params(k_p, C, H)

    fwd = jax.jit(lambda e_, m_, p_: triangle_attention_ungated(e_, m_, p_, H))
    out = jax.block_until_ready(fwd(e, mask, params))

    ref = triangle_attention_reference(e, mask, params, H)
    assert out.shape == (B, N, N, C)
    assert bool(jnp.all(jnp.isfinite(out)))
    max_err = float(jnp.max(jnp.abs(out - ref)))
    # tolerance accounts for bf16 matmul operands, bf16 attention-output writeback,
    # the approximate EUP reciprocal, and (on v6e/v7x) the bf16 exp softmax path.
    assert max_err < 4e-2, f"mismatch vs reference: {max_err}"

    print("KERNEL_OK")
</pallas_src>

<mosaic_0001>
module attributes {stable_mosaic.version = 11 : i64} {
  func.func @_triangle_attn_kernel(%arg0: i32, %arg1: i32, %arg2: memref<1x8x8x8xbf16, #tpu.memory_space<vmem>>, %arg3: memref<1x8x8x8xbf16, #tpu.memory_space<vmem>>, %arg4: memref<1x8x8x8xbf16, #tpu.memory_space<vmem>>, %arg5: memref<1x8x8xf32, #tpu.memory_space<vmem>>, %arg6: memref<1x8x8x8xbf16, #tpu.memory_space<vmem>>) attributes {dimension_semantics = [#tpu.dimension_semantics<parallel>, #tpu.dimension_semantics<arbitrary>], iteration_bounds = array<i64: 16, 1>, scalar_prefetch = 0 : i64, scratch_operands = 0 : i64, tpu.core_type = #tpu.core_type<tc>, window_params = [{transform_indices = @transform_0, window_bounds = array<i64: 1, 8, 8, 8>}, {transform_indices = @transform_1, window_bounds = array<i64: 1, 8, 8, 8>}, {transform_indices = @transform_2, window_bounds = array<i64: 1, 8, 8, 8>}, {transform_indices = @transform_3, window_bounds = array<i64: 1, 8, 8>}, {transform_indices = @transform_4, window_bounds = array<i64: 1, 8, 8, 8>}]} {
    %c0 = arith.constant 0 : index
    %c0_0 = arith.constant 0 : index
    %c0_1 = arith.constant 0 : index
    %c0_2 = arith.constant 0 : index
    %0 = vector.load %arg2[%c0, %c0_0, %c0_1, %c0_2] : memref<1x8x8x8xbf16, #tpu.memory_space<vmem>>, vector<1x8x8x8xbf16>
    %1 = vector.shape_cast %0 : vector<1x8x8x8xbf16> to vector<8x8x8xbf16>
    %c0_3 = arith.constant 0 : index
    %c0_4 = arith.constant 0 : index
    %c0_5 = arith.constant 0 : index
    %c0_6 = arith.constant 0 : index
    %2 = vector.load %arg3[%c0_3, %c0_4, %c0_5, %c0_6] : memref<1x8x8x8xbf16, #tpu.memory_space<vmem>>, vector<1x8x8x8xbf16>
    %3 = vector.shape_cast %2 : vector<1x8x8x8xbf16> to vector<8x8x8xbf16>
    %c0_7 = arith.constant 0 : index
    %c0_8 = arith.constant 0 : index
    %c0_9 = arith.constant 0 : index
    %c0_10 = arith.constant 0 : index
    %4 = vector.load %arg4[%c0_7, %c0_8, %c0_9, %c0_10] : memref<1x8x8x8xbf16, #tpu.memory_space<vmem>>, vector<1x8x8x8xbf16>
    %5 = vector.shape_cast %4 : vector<1x8x8x8xbf16> to vector<8x8x8xbf16>
    %c0_11 = arith.constant 0 : index
    %c0_12 = arith.constant 0 : index
    %c0_13 = arith.constant 0 : index
    %6 = vector.load %arg5[%c0_11, %c0_12, %c0_13] : memref<1x8x8xf32, #tpu.memory_space<vmem>>, vector<1x8x8xf32>
    %7 = vector.shape_cast %6 : vector<1x8x8xf32> to vector<8x8xf32>
    "tpu.trace_start"() <{level = 10 : i32, message = "jdi,jdk->jik"}> : () -> ()
    %cst = arith.constant dense<0.000000e+00> : vector<8x8x8xf32>
    %8 = tpu.matmul %1, %3, %cst {dimension_numbers = #tpu.dot_dimension_numbers<[1], [1], [2], [2], [0, 0, 0, 2, 1, 2], [0], [0]>} : vector<8x8x8xbf16>, vector<8x8x8xbf16>, vector<8x8x8xf32> -> vector<8x8x8xf32>
    "tpu.trace_stop"() : () -> ()
    %9 = vector.shape_cast %7 : vector<8x8xf32> to vector<1x8x8xf32>
    %10 = vector.broadcast %9 : vector<1x8x8xf32> to vector<8x8x8xf32>
    %11 = arith.addf %8, %10 : vector<8x8x8xf32>
    %cst_14 = arith.constant dense<0xFF800000> : vector<8x8xf32>
    %12 = vector.multi_reduction <maximumf>, %11, %cst_14 [2] : vector<8x8x8xf32> to vector<8x8xf32>
    %13 = vector.shape_cast %12 : vector<8x8xf32> to vector<8x8x1xf32>
    %14 = vector.broadcast %13 : vector<8x8x1xf32> to vector<8x8x8xf32>
    %15 = arith.subf %11, %14 : vector<8x8x8xf32>
    %16 = arith.truncf %15 : vector<8x8x8xf32> to vector<8x8x8xbf16>
    %17 = math.exp %16 : vector<8x8x8xbf16>
    %18 = arith.extf %17 : vector<8x8x8xbf16> to vector<8x8x8xf32>
    %cst_15 = arith.constant dense<0.000000e+00> : vector<8x8xf32>
    %19 = vector.multi_reduction <add>, %18, %cst_15 [2] : vector<8x8x8xf32> to vector<8x8xf32>
    "tpu.trace_start"() <{level = 10 : i32, message = "jdk,jik->jdi"}> : () -> ()
    %cst_16 = arith.constant dense<0.000000e+00> : vector<8x8x8xf32>
    %20 = tpu.matmul %5, %17, %cst_16 {dimension_numbers = #tpu.dot_dimension_numbers<[2], [2], [1], [1], [0, 0, 0, 1, 1, 1], [0], [0]>} : vector<8x8x8xbf16>, vector<8x8x8xbf16>, vector<8x8x8xf32> -> vector<8x8x8xf32>
    "tpu.trace_stop"() : () -> ()
    %21 = tpu.reciprocal %19 {approx = true} : vector<8x8xf32> -> vector<8x8xf32>
    %22 = vector.shape_cast %21 : vector<8x8xf32> to vector<8x1x8xf32>
    %23 = vector.broadcast %22 : vector<8x1x8xf32> to vector<8x8x8xf32>
    %24 = arith.mulf %20, %23 : vector<8x8x8xf32>
    %25 = arith.truncf %24 : vector<8x8x8xf32> to vector<8x8x8xbf16>
    %c0_17 = arith.constant 0 : index
    %c0_18 = arith.constant 0 : index
    %c0_19 = arith.constant 0 : index
    %c0_20 = arith.constant 0 : index
    %26 = vector.load %arg6[%c0_17, %c0_18, %c0_19, %c0_20] : memref<1x8x8x8xbf16, #tpu.memory_space<vmem>>, vector<1x8x8x8xbf16>
    %27 = vector.shape_cast %26 : vector<1x8x8x8xbf16> to vector<8x8x8xbf16>
    %28 = vector.shape_cast %25 : vector<8x8x8xbf16> to vector<1x8x8x8xbf16>
    tpu.vector_store %arg6[%c0_17, %c0_18, %c0_19, %c0_20], %28 {strides = array<i32>} : memref<1x8x8x8xbf16, #tpu.memory_space<vmem>>, vector<1x8x8x8xbf16>,
    return
  }
  func.func @transform_0(%arg0: i32, %arg1: i32) -> (i32, i32, i32, i32) {
    %c0_i32 = arith.constant 0 : i32
    %c0_i32_0 = arith.constant 0 : i32
    %c0_i32_1 = arith.constant 0 : i32
    return %arg0, %arg1, %c0_i32, %c0_i32_0 : i32, i32, i32, i32
  }
  func.func @transform_1(%arg0: i32, %arg1: i32) -> (i32, i32, i32, i32) {
    %c0_i32 = arith.constant 0 : i32
    %c0_i32_0 = arith.constant 0 : i32
    %c0_i32_1 = arith.constant 0 : i32
    return %arg0, %arg1, %c0_i32, %c0_i32_0 : i32, i32, i32, i32
  }
  func.func @transform_2(%arg0: i32, %arg1: i32) -> (i32, i32, i32, i32) {
    %c0_i32 = arith.constant 0 : i32
    %c0_i32_0 = arith.constant 0 : i32
    %c0_i32_1 = arith.constant 0 : i32
    return %arg0, %arg1, %c0_i32, %c0_i32_0 : i32, i32, i32, i32
  }
  func.func @transform_3(%arg0: i32, %arg1: i32) -> (i32, i32, i32) {
    %c0_i32 = arith.constant 0 : i32
    %c0_i32_0 = arith.constant 0 : i32
    %c0_i32_1 = arith.constant 0 : i32
    return %arg0, %c0_i32, %c0_i32_0 : i32, i32, i32
  }
  func.func @transform_4(%arg0: i32, %arg1: i32) -> (i32, i32, i32, i32) {
    %c0_i32 = arith.constant 0 : i32
    %c0_i32_0 = arith.constant 0 : i32
    %c0_i32_1 = arith.constant 0 : i32
    return %arg0, %arg1, %c0_i32, %c0_i32_0 : i32, i32, i32, i32
  }
}

</mosaic_0001>

<bundles_post_ra>
// kernel: _lambda_.1
= control target key start
LH: loop header
LB: loop body
LE: loop exit
PB: predicated region body
PF: predicated region fallthrough
CT: control target
= control target key end

     0   :  { %s1860_s15 = smov 0   ;;  %s1862_s16 = smov 0   ;;  %s2056_s0 = inlined_call_operand.vmem [shape: bf16[16,8,8,8], index: 0, kind: input, shape index: {}]   ;;  %s2057_s1 = inlined_call_operand.vmem [shape: bf16[16,8,8,8], index: 1, kind: input, shape index: {}]   ;;  %s2058_s2 = inlined_call_operand.vmem [shape: bf16[16,8,8,8], index: 2, kind: input, shape index: {}]   ;;  %s2059_s3 = inlined_call_operand.vmem [shape: f32[16,8,8], index: 3, kind: input, shape index: {}]   ;;  %s2060_s4 = inlined_call_operand.vmem [shape: bf16[16,8,8,8], index: 4, kind: output, shape index: {}]  }
   0x1   :  { %s1864_s17 = smov 0  }
   0x2 LB: > { %s26_s18 = sadd.s32 1, %s1827_s16  ;;  %p1590_p0 = scmp.ge.s32.totalorder %s1831_s17, 1  ;;  %s1831_s17 = sphi %s1864_s17, %s14_s17   ;;  %s1827_s16 = sphi %s1862_s16, %s2062_s16   ;;  %s1823_s15 = sphi %s1860_s15, %s2061_s15  }
   0x3   : > { %p28_p1 = scmp.ge.s32.totalorder %s26_s18, 16  ;;  %p226_p2 = scmp.lt.s32.totalorder %s1831_s17, 17 }
   0x5   : > { %s2064_s18 = smov (%p28_p1, %s26_s18), 0  ;;  %p227_p3 = pnand %p1590_p0, %p226_p2 }
   0x6   : > { %p283_p4 = scmp.lt.s32.totalorder (!%p227_p3), %s1823_s15, 15 }
   0x7   : > { %230 = sbr.rel (%p227_p3) target bundleno = 705 (0x2c1), region = 36 }
   0xc   : > { %v1833_v0 = vmov 0.0   ;;  %vm1834_vm0 = vmmov 0   ;;  %s2066_s15 = smov (!%p283_p4, %s1823_s15), 15  ;;  %vm372_vm1 = vcmask 1043456   ;;  %vm368_vm2 = vcmask 64512  }
   0xd   : > { %1654 = vmatprep.subr.bf16.mxu0 %v1833_v0  ;;  %1656 = vmatprep.mubr.msk.bf16.mxu0 %vm1834_vm0, %v1833_v0  ;;  %s1887_s19 = sshll.u32 %s2066_s15, 5  ;;  %s1597_s26 = sshll.u32 %s2066_s15, 3  ;;  %vm1442_vm3 = vcmask 60416  }
   0xe   : > { %1660 = vmatprep.subr.bf16.mxu1 %v1833_v0  ;;  %1662 = vmatprep.mubr.msk.bf16.mxu1 %vm1834_vm0, %v1833_v0  ;;  %s1893_s22 = scalar_lea.vmem %s2056_s0, %s1887_s19  ;;  %s300_s25 = scalar_lea.vmem %s2057_s1, %s1887_s19 }
   0xf   : > { %v327_v1 = vld [vmem:[%s1893_s22] sm:$0xf]  ;;  %v329_v2 = vld [vmem:[%s1893_s22 + $0x8] sm:$0xf]  ;;  %v328_v3 = vld [vmem:[%s1893_s22 + $0x4] sm:$0xf]  ;;  %s315_s29 = scalar_lea.vmem %s2059_s3, %s1597_s26  ;;  %s1965_s6 = scalar_lea.vmem %s2058_s2, %s1887_s19 }
  0x10   : > { %352 = vxpose.xlu0.c.b16.start.end [1/1] (short) (narrow) %v327_v1, 16  ;;  %478 = vxpose.xlu1.c.b16.start.end [1/1] (short) (narrow) %v329_v2, 16  ;;  %v330_v4 = vld [vmem:[%s1893_s22 + $0xc] sm:$0xf]  ;;  %v335_v5 = vld [vmem:[%s300_s25] sm:$0xf]  ;;  %s2022_s9 = scalar_lea.vmem %s2060_s4, %s1887_s19 }
  0x11   : > { %v336_v6 = vld [vmem:[%s300_s25 + $0x4] sm:$0xf]  ;;  %v337_v7 = vld [vmem:[%s300_s25 + $0x8] sm:$0xf]  ;;  %v331_v8 = vld [vmem:[%s1893_s22 + $0x10] sm:$0xf] }
  0x12   : > { %v332_v9 = vld [vmem:[%s1893_s22 + $0x14] sm:$0xf]  ;;  %v374_v10 = vsel %vm372_vm1, %v335_v5, 0  ;;  %v436_v11 = vsel %vm372_vm1, %v336_v6, 0  ;;  %v498_v12 = vsel %vm372_vm1, %v337_v7, 0  ;;  %v351_v33 = vld [vmem:[%s315_s29] sm:$0xff] }
  0x13   : > { %v338_v13 = vld [vmem:[%s300_s25 + $0xc] sm:$0xf]  ;;  %v339_v15 = vld [vmem:[%s300_s25 + $0x10] sm:$0xf]  ;;  %1655 = vmatpush3.bf16.msra.mxu0 %v374_v10  ;;  %1661 = vmatpush3.bf16.msra.mxu1 %v436_v11  ;;  %v340_v17 = vld [vmem:[%s300_s25 + $0x14] sm:$0xf] }
  0x14   : > { %416 = vxpose.xlu0.c.b16.start.end [1/1] (short) (narrow) %v328_v3, 16  ;;  %540 = vxpose.xlu1.c.b16.start.end [1/1] (short) (narrow) %v330_v4, 16  ;;  %v560_v14 = vsel %vm372_vm1, %v338_v13, 0  ;;  %v622_v16 = vsel %vm372_vm1, %v339_v15, 0  ;;  %v341_v18 = vld [vmem:[%s300_s25 + $0x18] sm:$0xf] }
  0x15   : > { %1666 = vmatprep.subr.bf16.mxu0 %v1833_v0  ;;  %1672 = vmatprep.subr.bf16.mxu1 %v1833_v0  ;;  %v684_v19 = vsel %vm372_vm1, %v340_v17, 0  ;;  %v746_v20 = vsel %vm372_vm1, %v341_v18, 0  ;;  %v342_v21 = vld [vmem:[%s300_s25 + $0x1c] sm:$0xf]  ;;  %v333_v23 = vld [vmem:[%s1893_s22 + $0x18] sm:$0xf] }
  0x16   : > { %v808_v22 = vsel %vm372_vm1, %v342_v21, 0  ;;  %v334_v24 = vld [vmem:[%s1893_s22 + $0x1c] sm:$0xf] }
  0x18   : > { %602 = vxpose.xlu0.c.b16.start.end [1/1] (short) (narrow) %v331_v8, 16  ;;  %664 = vxpose.xlu1.c.b16.start.end [1/1] (short) (narrow) %v332_v9, 16 }
  0x1c   : > { %726 = vxpose.xlu0.c.b16.start.end [1/1] (short) (narrow) %v333_v23, 16  ;;  %788 = vxpose.xlu1.c.b16.start.end [1/1] (short) (narrow) %v334_v24, 16 }
  0x72   : > { %v360_v25 = vpop.trf.xlu0  ;;  %v486_v27 = vpop.trf.xlu1 }
  0x73   : > { %1657 = vmatmul.mubr.msk.bf16.vlgmr.msra.gmra.mxu0 %vm368_vm2, %v360_v25 }
  0x74   : > { %1667 = vmatpush3.bf16.msra.mxu0 %v498_v12  ;;  %1668 = vmatprep.mubr.msk.bf16.mxu0 %vm1834_vm0, %v1833_v0 }
  0x75   : > { %1678 = vmatprep.subr.bf16.mxu0 %v1833_v0 }
  0x76   : > { %v424_v26 = vpop.trf.xlu0  ;;  %v548_v28 = vpop.trf.xlu1 }
  0x77   : > { %1663 = vmatmul.mubr.msk.bf16.vlgmr.msra.gmra.mxu1 %vm368_vm2, %v424_v26 }
  0x78   : > { %1673 = vmatpush3.bf16.msra.mxu1 %v560_v14  ;;  %1674 = vmatprep.mubr.msk.bf16.mxu1 %vm1834_vm0, %v1833_v0 }
  0x79   : > { %1684 = vmatprep.subr.bf16.mxu1 %v1833_v0 }
  0x7a   : > { %v610_v29 = vpop.trf.xlu0  ;;  %v672_v30 = vpop.trf.xlu1 }
  0x7b   : > { %1669 = vmatmul.mubr.msk.bf16.vlgmr.msra.gmra.mxu0 %vm368_vm2, %v486_v27 }
  0x7c   : > { %1679 = vmatpush3.bf16.msra.mxu0 %v622_v16  ;;  %1680 = vmatprep.mubr.msk.bf16.mxu0 %vm1834_vm0, %v1833_v0 }
  0x7d   : > { %1690 = vmatprep.subr.bf16.mxu0 %v1833_v0 }
  0x7e   : > { %v734_v31 = vpop.trf.xlu0  ;;  %v796_v32 = vpop.trf.xlu1 }
  0x7f   : > { %1675 = vmatmul.mubr.msk.bf16.vlgmr.msra.gmra.mxu1 %vm368_vm2, %v548_v28 }
  0x80   : > { %1685 = vmatpush3.bf16.msra.mxu1 %v684_v19  ;;  %1686 = vmatprep.mubr.msk.bf16.mxu1 %vm1834_vm0, %v1833_v0 }
  0x81   : > { %1696 = vmatprep.subr.bf16.mxu1 %v1833_v0 }
  0x83   : > { %1681 = vmatmul.mubr.msk.bf16.vlgmr.msra.gmra.mxu0 %vm368_vm2, %v610_v29 }
  0x84   : > { %1691 = vmatpush3.bf16.msra.mxu0 %v746_v20  ;;  %1692 = vmatprep.mubr.msk.bf16.mxu0 %vm1834_vm0, %v1833_v0 }
  0x85   : > { %1702 = vmatprep.subr.bf16.mxu0 %v1833_v0 }
  0x87   : > { %1687 = vmatmul.mubr.msk.bf16.vlgmr.msra.gmra.mxu1 %vm368_vm2, %v672_v30 }
  0x88   : > { %1697 = vmatpush3.bf16.msra.mxu1 %v808_v22  ;;  %1698 = vmatprep.mubr.msk.bf16.mxu1 %vm1834_vm0, %v1833_v0 }
  0x89   : > { %1708 = vmatprep.subr.bf16.mxu1 %v1833_v0 }
  0x8b   : > { %1693 = vmatmul.mubr.msk.bf16.vlgmr.msra.gmra.mxu0 %vm368_vm2, %v734_v31 }
  0x8c   : > { %1704 = vmatprep.mubr.msk.bf16.mxu0 %vm1834_vm0, %v1833_v0 }
  0x8f   : > { %1699 = vmatmul.mubr.msk.bf16.vlgmr.msra.gmra.mxu1 %vm368_vm2, %v796_v32 }
  0x90   : > { %1710 = vmatprep.mubr.msk.bf16.mxu1 %vm1834_vm0, %v1833_v0 }
 0x133   : > { %v410_v34 = vpop.f32.mrf.mxu0 }
 0x134   : > { %v411_v35 = vadd.f32 %v410_v34, %v351_v33 }
 0x135   : > { %v1658_v36 = vpop.f32.mrf.mxu0 }
 0x136   : > { %v850_v37 = vsel %vm368_vm2, %v411_v35, -inf }
 0x137   : > { %851 = vmax.xlane.f32.xlu0 %v850_v37  ;;  %v413_v38 = vpop.f32.mrf.mxu0  ;;  %v472_v39 = vpop.f32.mrf.mxu1 }
 0x138   : > { %v473_v40 = vadd.f32 %v472_v39, %v351_v33 }
 0x139   : > { %v1659_v41 = vpop.f32.mrf.mxu0  ;;  %v1664_v42 = vpop.f32.mrf.mxu1 }
 0x13a   : > { %v853_v43 = vsel %vm368_vm2, %v473_v40, -inf }
 0x13b   : > { %v534_v44 = vpop.f32.mrf.mxu0  ;;  %854 = vmax.xlane.f32.xlu1 %v853_v43  ;;  %v475_v45 = vpop.f32.mrf.mxu1 }
 0x13c   : > { %v535_v46 = vadd.f32 %v534_v44, %v351_v33 }
 0x13d   : > { %v1665_v47 = vpop.f32.mrf.mxu1  ;;  %v1670_v48 = vpop.f32.mrf.mxu0 }
 0x13e   : > { %v856_v49 = vsel %vm368_vm2, %v535_v46, -inf }
 0x13f   : > { %857 = vmax.xlane.f32.xlu0 %v856_v49  ;;  %v537_v50 = vpop.f32.mrf.mxu0  ;;  %v596_v51 = vpop.f32.mrf.mxu1 }
 0x140   : > { %v597_v52 = vadd.f32 %v596_v51, %v351_v33 }
 0x141   : > { %v1671_v53 = vpop.f32.mrf.mxu0  ;;  %v1676_v54 = vpop.f32.mrf.mxu1 }
 0x142   : > { %v859_v55 = vsel %vm368_vm2, %v597_v52, -inf  ;;  %v343_v53 = vld [vmem:[%s1965_s6] sm:$0xf] }
 0x143   : > { %860 = vmax.xlane.f32.xlu1 %v859_v55  ;;  %v599_v56 = vpop.f32.mrf.mxu1  ;;  %v658_v57 = vpop.f32.mrf.mxu0 }
 0x144   : > { %v659_v58 = vadd.f32 %v658_v57, %v351_v33 }
 0x145   : > { %v1677_v59 = vpop.f32.mrf.mxu1  ;;  %v1682_v60 = vpop.f32.mrf.mxu0 }
 0x146   : > { %v862_v61 = vsel %vm368_vm2, %v659_v58, -inf }
 0x147   : > { %v720_v62 = vpop.f32.mrf.mxu1  ;;  %863 = vmax.xlane.f32.xlu0 %v862_v61  ;;  %v661_v63 = vpop.f32.mrf.mxu0 }
 0x148   : > { %v721_v1 = vadd.f32 %v720_v62, %v351_v33  ;;  %v344_v62 = vld [vmem:[%s1965_s6 + $0x4] sm:$0xf] }
 0x149   : > { %v1683_v2 = vpop.f32.mrf.mxu0  ;;  %v1688_v3 = vpop.f32.mrf.mxu1 }
 0x14a   : > { %v865_v4 = vsel %vm368_vm2, %v721_v1, -inf }
 0x14b   : > { %866 = vmax.xlane.f32.xlu1 %v865_v4  ;;  %v723_v5 = vpop.f32.mrf.mxu1  ;;  %v782_v6 = vpop.f32.mrf.mxu0 }
 0x14c   : > { %v783_v7 = vadd.f32 %v782_v6, %v351_v33  ;;  %v345_v5 = vld [vmem:[%s1965_s6 + $0x8] sm:$0xf] }
 0x14d   : > { %v1689_v8 = vpop.f32.mrf.mxu1  ;;  %v1694_v9 = vpop.f32.mrf.mxu0 }
 0x14e   : > { %v868_v10 = vsel %vm368_vm2, %v783_v7, -inf }
 0x14f   : > { %v844_v11 = vpop.f32.mrf.mxu1  ;;  %869 = vmax.xlane.f32.xlu0 %v868_v10  ;;  %v785_v12 = vpop.f32.mrf.mxu0  ;;  %v346_v10 = vld [vmem:[%s1965_s6 + $0xc] sm:$0xf] }
 0x150   : > { %v845_v13 = vadd.f32 %v844_v11, %v351_v33 }
 0x151   : > { %v1695_v14 = vpop.f32.mrf.mxu0  ;;  %v1700_v15 = vpop.f32.mrf.mxu1 }
 0x152   : > { %v871_v16 = vsel %vm368_vm2, %v845_v13, -inf  ;;  %v347_v15 = vld [vmem:[%s1965_s6 + $0x10] sm:$0xf] }
 0x153   : > { %872 = vmax.xlane.f32.xlu1 %v871_v16  ;;  %v847_v17 = vpop.f32.mrf.mxu1 }
 0x155   : > { %v1701_v18 = vpop.f32.mrf.mxu1 }
 0x1c0   : > { %v852_v19 = vpop.xlane.xlu0 %851 }
 0x1c1   : > { %v874_v20 = vsub.f32 %v411_v35, %v852_v19 }
 0x1c3   : > { %v882_v21 = vpack.c.bf16 %v874_v20, %v874_v20  ;;  %v348_v20 = vld [vmem:[%s1965_s6 + $0x14] sm:$0xf] }
 0x1c4   : > { %v855_v22 = vpop.xlane.xlu1 %854 }
 0x1c5   : > { %v891_v23 = vmul.bf16 1069105081, %v882_v21  ;;  %v875_v24 = vsub.f32 %v473_v40, %v855_v22 }
 0x1c7   : > { %1777 = vpow.bf16 %v891_v23  ;;  %v883_v25 = vpack.c.bf16 %v875_v24, %v875_v24 }
 0x1c8   : > { %v858_v26 = vpop.xlane.xlu0 %857 }
 0x1c9   : > { %v894_v27 = vmul.bf16 1069105081, %v883_v25  ;;  %v876_v28 = vsub.f32 %v535_v46, %v858_v26  ;;  %v349_v25 = vld [vmem:[%s1965_s6 + $0x18] sm:$0xf] }
 0x1cb   : > { %1779 = vpow.bf16 %v894_v27  ;;  %v884_v29 = vpack.c.bf16 %v876_v28, %v876_v28  ;;  %v350_v27 = vld [vmem:[%s1965_s6 + $0x1c] sm:$0xf] }
 0x1cc   : > { %v861_v30 = vpop.xlane.xlu1 %860 }
 0x1cd   : > { %v897_v31 = vmul.bf16 1069105081, %v884_v29  ;;  %v877_v32 = vsub.f32 %v597_v52, %v861_v30  ;;  %v1330_v30 = vlaneseq }
 0x1cf   : > { %1781 = vpow.bf16 %v897_v31  ;;  %v885_v33 = vpack.c.bf16 %v877_v32, %v877_v32  ;;  %v1331_v32 = vand.u32 127, %v1330_v30 }
 0x1d0   : > { %v864_v34 = vpop.xlane.xlu0 %863 }
 0x1d1   : > { %v900_v36 = vmul.bf16 1069105081, %v885_v33  ;;  %v878_v35 = vsub.f32 %v659_v58, %v864_v34  ;;  %v1333_v33 = vshrl.u32 %v1330_v30, 7 }
 0x1d3   : > { %1783 = vpow.bf16 %v900_v36  ;;  %v886_v37 = vpack.c.bf16 %v878_v35, %v878_v35 }
 0x1d4   : > { %v867_v38 = vpop.xlane.xlu1 %866 }
 0x1d5   : > { %v1778_v39 = vpop.eup %1777  ;;  %v903_v40 = vmul.bf16 1069105081, %v886_v37  ;;  %v879_v41 = vsub.f32 %v721_v1, %v867_v38 }
 0x1d6   : > { %v950_v42 = vsel %vm368_vm2, %v1778_v39, 0  ;;  %v914_v43 = vunpack.c.l.bf16 %v1778_v39 }
 0x1d7   : > { %1785 = vpow.bf16 %v903_v40  ;;  %v887_v44 = vpack.c.bf16 %v879_v41, %v879_v41  ;;  %1703 = vmatpush3.bf16.xpose.msra.mxu0 %v950_v42 }
 0x1d8   : > { %v870_v45 = vpop.xlane.xlu0 %869  ;;  %v922_v46 = vsel %vm368_vm2, %v914_v43, 0.0  ;;  %1714 = vmatprep.subr.bf16.mxu0 %v1833_v0 }
 0x1d9   : > { %v1780_v47 = vpop.eup %1779  ;;  %v906_v48 = vmul.bf16 1069105081, %v887_v44  ;;  %v880_v49 = vsub.f32 %v783_v7, %v870_v45  ;;  %923 = vadd.xlane.f32.xlu0 %v922_v46 }
 0x1da   : > { %v996_v50 = vsel %vm368_vm2, %v1780_v47, 0  ;;  %v915_v51 = vunpack.c.l.bf16 %v1780_v47 }
 0x1db   : > { %1787 = vpow.bf16 %v906_v48  ;;  %v888_v52 = vpack.c.bf16 %v880_v49, %v880_v49  ;;  %1709 = vmatpush3.bf16.xpose.msra.mxu1 %v996_v50 }
 0x1dc   : > { %v873_v54 = vpop.xlane.xlu1 %872  ;;  %v925_v55 = vsel %vm368_vm2, %v915_v51, 0.0  ;;  %1720 = vmatprep.subr.bf16.mxu1 %v1833_v0 }
 0x1dd   : > { %v1782_v56 = vpop.eup %1781  ;;  %v909_v57 = vmul.bf16 1069105081, %v888_v52  ;;  %v881_v58 = vsub.f32 %v845_v13, %v873_v54  ;;  %926 = vadd.xlane.f32.xlu1 %v925_v55 }
 0x1de   : > { %1705 = vmatmul.mubr.msk.bf16.vlgmr.msra.gmra.mxu0 %vm368_vm2, %v343_v53  ;;  %v1042_v59 = vsel %vm368_vm2, %v1782_v56, 0  ;;  %v916_v60 = vunpack.c.l.bf16 %v1782_v56 }
 0x1df   : > { %1789 = vpow.bf16 %v909_v57  ;;  %v889_v61 = vpack.c.bf16 %v881_v58, %v881_v58  ;;  %1715 = vmatpush3.bf16.xpose.msra.mxu0 %v1042_v59  ;;  %1716 = vmatprep.mubr.msk.bf16.mxu0 %vm1834_vm0, %v1833_v0 }
 0x1e0   : > { %v928_v63 = vsel %vm368_vm2, %v916_v60, 0.0  ;;  %1726 = vmatprep.subr.bf16.mxu0 %v1833_v0 }
 0x1e1   : > { %v1784_v1 = vpop.eup %1783  ;;  %v912_v2 = vmul.bf16 1069105081, %v889_v61  ;;  %929 = vadd.xlane.f32.xlu0 %v928_v63 }
 0x1e2   : > { %1711 = vmatmul.mubr.msk.bf16.vlgmr.msra.gmra.mxu1 %vm368_vm2, %v344_v62  ;;  %v1088_v3 = vsel %vm368_vm2, %v1784_v1, 0  ;;  %v917_v4 = vunpack.c.l.bf16 %v1784_v1 }
 0x1e3   : > { %1791 = vpow.bf16 %v912_v2  ;;  %1721 = vmatpush3.bf16.xpose.msra.mxu1 %v1088_v3  ;;  %1722 = vmatprep.mubr.msk.bf16.mxu1 %vm1834_vm0, %v1833_v0 }
 0x1e4   : > { %v931_v6 = vsel %vm368_vm2, %v917_v4, 0.0  ;;  %1732 = vmatprep.subr.bf16.mxu1 %v1833_v0 }
 0x1e5   : > { %v1786_v7 = vpop.eup %1785  ;;  %932 = vadd.xlane.f32.xlu1 %v931_v6 }
 0x1e6   : > { %1717 = vmatmul.mubr.msk.bf16.vlgmr.msra.gmra.mxu0 %vm368_vm2, %v345_v5  ;;  %v1134_v8 = vsel %vm368_vm2, %v1786_v7, 0  ;;  %v918_v9 = vunpack.c.l.bf16 %v1786_v7 }
 0x1e7   : > { %1727 = vmatpush3.bf16.xpose.msra.mxu0 %v1134_v8  ;;  %1728 = vmatprep.mubr.msk.bf16.mxu0 %vm1834_vm0, %v1833_v0 }
 0x1e8   : > { %v934_v11 = vsel %vm368_vm2, %v918_v9, 0.0  ;;  %1738 = vmatprep.subr.bf16.mxu0 %v1833_v0 }
 0x1e9   : > { %v1788_v12 = vpop.eup %1787  ;;  %935 = vadd.xlane.f32.xlu0 %v934_v11 }
 0x1ea   : > { %1723 = vmatmul.mubr.msk.bf16.vlgmr.msra.gmra.mxu1 %vm368_vm2, %v346_v10  ;;  %v1180_v13 = vsel %vm368_vm2, %v1788_v12, 0  ;;  %v919_v14 = vunpack.c.l.bf16 %v1788_v12 }
 0x1eb   : > { %1733 = vmatpush3.bf16.xpose.msra.mxu1 %v1180_v13  ;;  %1734 = vmatprep.mubr.msk.bf16.mxu1 %vm1834_vm0, %v1833_v0 }
 0x1ec   : > { %v937_v16 = vsel %vm368_vm2, %v919_v14, 0.0  ;;  %1744 = vmatprep.subr.bf16.mxu1 %v1833_v0 }
 0x1ed   : > { %v1790_v17 = vpop.eup %1789  ;;  %938 = vadd.xlane.f32.xlu1 %v937_v16 }
 0x1ee   : > { %1729 = vmatmul.mubr.msk.bf16.vlgmr.msra.gmra.mxu0 %vm368_vm2, %v347_v15  ;;  %v1226_v18 = vsel %vm368_vm2, %v1790_v17, 0  ;;  %v920_v19 = vunpack.c.l.bf16 %v1790_v17 }
 0x1ef   : > { %1739 = vmatpush3.bf16.xpose.msra.mxu0 %v1226_v18  ;;  %1740 = vmatprep.mubr.msk.bf16.mxu0 %vm1834_vm0, %v1833_v0 }
 0x1f0   : > { %v940_v21 = vsel %vm368_vm2, %v920_v19, 0.0 }
 0x1f1   : > { %v1792_v22 = vpop.eup %1791  ;;  %941 = vadd.xlane.f32.xlu0 %v940_v21 }
 0x1f2   : > { %1735 = vmatmul.mubr.msk.bf16.vlgmr.msra.gmra.mxu1 %vm368_vm2, %v348_v20  ;;  %v1272_v23 = vsel %vm368_vm2, %v1792_v22, 0  ;;  %v921_v24 = vunpack.c.l.bf16 %v1792_v22 }
 0x1f3   : > { %1745 = vmatpush3.bf16.xpose.msra.mxu1 %v1272_v23  ;;  %1746 = vmatprep.mubr.msk.bf16.mxu1 %vm1834_vm0, %v1833_v0  ;;  %v2015_v0 = vsub.s32 %v1331_v32, %v1333_v33 }
 0x1f4   : > { %v943_v26 = vsel %vm368_vm2, %v921_v24, 0.0 }
 0x1f5   : > { %944 = vadd.xlane.f32.xlu1 %v943_v26 }
 0x1f6   : > { %1741 = vmatmul.mubr.msk.bf16.vlgmr.msra.gmra.mxu0 %vm368_vm2, %v349_v25 }
 0x1fa   : > { %1747 = vmatmul.mubr.msk.bf16.vlgmr.msra.gmra.mxu1 %vm368_vm2, %v350_v27 }
 0x262   : > { %v924_v28 = vpop.xlane.xlu0 %923 }
 0x263   : > { %1793 = vrcp.f32 %v924_v28 }
 0x266   : > { %v927_v29 = vpop.xlane.xlu1 %926 }
 0x267   : > { %1795 = vrcp.f32 %v927_v29 }
 0x26a   : > { %v930_v31 = vpop.xlane.xlu0 %929 }
 0x26b   : > { %1797 = vrcp.f32 %v930_v31 }
 0x26e   : > { %v933_v34 = vpop.xlane.xlu1 %932 }
 0x26f   : > { %1799 = vrcp.f32 %v933_v34 }
 0x270   : > { %v1794_v36 = vpop.eup %1793 }
 0x271   : > { %v1335_v37 = vrot.slane %v1794_v36, %v2015_v0 }
 0x272   : > { %v936_v35 = vpop.xlane.xlu0 %935 }
 0x273   : > { %1801 = vrcp.f32 %v936_v35 }
 0x274   : > { %v1796_v38 = vpop.eup %1795 }
 0x275   : > { %v1339_v45 = vrot.slane %v1796_v38, %v2015_v0 }
 0x276   : > { %v939_v39 = vpop.xlane.xlu1 %938 }
 0x277   : > { %1803 = vrcp.f32 %v939_v39 }
 0x278   : > { %v1798_v46 = vpop.eup %1797 }
 0x279   : > { %v1343_v54 = vrot.slane %v1798_v46, %v2015_v0 }
 0x27a   : > { %v942_v43 = vpop.xlane.xlu0 %941 }
 0x27b   : > { %1805 = vrcp.f32 %v942_v43 }
 0x27c   : > { %v1800_v55 = vpop.eup %1799 }
 0x27d   : > { %v1347_v62 = vrot.slane %v1800_v55, %v2015_v0 }
 0x27e   : > { %v945_v52 = vpop.xlane.xlu1 %944 }
 0x27f   : > { %1807 = vrcp.f32 %v945_v52 }
 0x280   : > { %v1802_v63 = vpop.eup %1801 }
 0x281   : > { %v1351_v7 = vrot.slane %v1802_v63, %v2015_v0 }
 0x284   : > { %v1804_v8 = vpop.eup %1803 }
 0x285   : > { %v1355_v15 = vrot.slane %v1804_v8, %v2015_v0 }
 0x288   : > { %v1806_v16 = vpop.eup %1805 }
 0x289   : > { %v1359_v23 = vrot.slane %v1806_v16, %v2015_v0 }
 0x28c   : > { %v1808_v24 = vpop.eup %1807 }
 0x28d   : > { %v1363_v31 = vrot.slane %v1808_v24, %v2015_v0 }
 0x29e   : > { %v986_v40 = vpop.f32.mrf.mxu0 }
 0x29f   : > { %v1426_v41 = vmul.f32 %v1335_v37, %v986_v40 }
 0x2a0   : > { %v1706_v42 = vpop.f32.mrf.mxu0 }
 0x2a1   : > { %v1434_v44 = vpack.c.bf16 %v1426_v41, %v1426_v41 }
 0x2a2   : > { %v989_v47 = vpop.f32.mrf.mxu0  ;;  %v1032_v48 = vpop.f32.mrf.mxu1 }
 0x2a3   : > { %1443 = vst.msk [vmem:[%s2022_s9] sm:$0xf] %vm1442_vm3, %v1434_v44  ;;  %v1427_v49 = vmul.f32 %v1339_v45, %v1032_v48 }
 0x2a4   : > { %v1707_v50 = vpop.f32.mrf.mxu0  ;;  %v1712_v51 = vpop.f32.mrf.mxu1 }
 0x2a5   : > { %v1435_v53 = vpack.c.bf16 %v1427_v49, %v1427_v49 }
 0x2a6   : > { %v1035_v56 = vpop.f32.mrf.mxu1  ;;  %v1078_v57 = vpop.f32.mrf.mxu0 }
 0x2a7   : > { %1444 = vst.msk [vmem:[%s2022_s9 + $0x4] sm:$0xf] %vm1442_vm3, %v1435_v53  ;;  %v1428_v58 = vmul.f32 %v1343_v54, %v1078_v57 }
 0x2a8   : > { %v1713_v59 = vpop.f32.mrf.mxu1  ;;  %v1718_v60 = vpop.f32.mrf.mxu0 }
 0x2a9   : > { %v1436_v61 = vpack.c.bf16 %v1428_v58, %v1428_v58 }
 0x2aa   : > { %v1081_v1 = vpop.f32.mrf.mxu0  ;;  %v1124_v2 = vpop.f32.mrf.mxu1 }
 0x2ab   : > { %1445 = vst.msk [vmem:[%s2022_s9 + $0x8] sm:$0xf] %vm1442_vm3, %v1436_v61  ;;  %v1429_v3 = vmul.f32 %v1347_v62, %v1124_v2 }
 0x2ac   : > { %v1719_v4 = vpop.f32.mrf.mxu0  ;;  %v1724_v5 = vpop.f32.mrf.mxu1 }
 0x2ad   : > { %v1437_v6 = vpack.c.bf16 %v1429_v3, %v1429_v3 }
 0x2ae   : > { %v1127_v9 = vpop.f32.mrf.mxu1  ;;  %v1170_v10 = vpop.f32.mrf.mxu0 }
 0x2af   : > { %1446 = vst.msk [vmem:[%s2022_s9 + $0xc] sm:$0xf] %vm1442_vm3, %v1437_v6  ;;  %v1430_v11 = vmul.f32 %v1351_v7, %v1170_v10 }
 0x2b0   : > { %v1725_v12 = vpop.f32.mrf.mxu1  ;;  %v1730_v13 = vpop.f32.mrf.mxu0 }
 0x2b1   : > { %v1438_v14 = vpack.c.bf16 %v1430_v11, %v1430_v11 }
 0x2b2   : > { %v1173_v17 = vpop.f32.mrf.mxu0  ;;  %v1216_v18 = vpop.f32.mrf.mxu1 }
 0x2b3   : > { %1447 = vst.msk [vmem:[%s2022_s9 + $0x10] sm:$0xf] %vm1442_vm3, %v1438_v14  ;;  %v1431_v19 = vmul.f32 %v1355_v15, %v1216_v18 }
 0x2b4   : > { %v1731_v20 = vpop.f32.mrf.mxu0  ;;  %v1736_v21 = vpop.f32.mrf.mxu1 }
 0x2b5   : > { %v1439_v22 = vpack.c.bf16 %v1431_v19, %v1431_v19 }
 0x2b6   : > { %v1219_v25 = vpop.f32.mrf.mxu1  ;;  %v1262_v26 = vpop.f32.mrf.mxu0 }
 0x2b7   : > { %1448 = vst.msk [vmem:[%s2022_s9 + $0x14] sm:$0xf] %vm1442_vm3, %v1439_v22  ;;  %v1432_v27 = vmul.f32 %v1359_v23, %v1262_v26 }
 0x2b8   : > { %v1737_v28 = vpop.f32.mrf.mxu1  ;;  %v1742_v29 = vpop.f32.mrf.mxu0 }
 0x2b9   : > { %v1440_v30 = vpack.c.bf16 %v1432_v27, %v1432_v27 }
 0x2ba   : > { %v1265_v32 = vpop.f32.mrf.mxu0  ;;  %v1308_v33 = vpop.f32.mrf.mxu1 }
 0x2bb   : > { %1449 = vst.msk [vmem:[%s2022_s9 + $0x18] sm:$0xf] %vm1442_vm3, %v1440_v30  ;;  %v1433_v34 = vmul.f32 %v1363_v31, %v1308_v33 }
 0x2bc   : > { %v1743_v36 = vpop.f32.mrf.mxu0  ;;  %v1748_v35 = vpop.f32.mrf.mxu1 }
 0x2bd   : > { %v1441_v37 = vpack.c.bf16 %v1433_v34, %v1433_v34 }
 0x2be   : > { %v1311_v38 = vpop.f32.mrf.mxu1 }
 0x2bf   : > { %1450 = vst.msk [vmem:[%s2022_s9 + $0x1c] sm:$0xf] %vm1442_vm3, %v1441_v37 }
 0x2c0   : > { %v1749_v39 = vpop.f32.mrf.mxu1 }
 0x2c1 PF: > { %s14_s17 = sadd.s32 1, %s1831_s17   ;;  %s2061_s15 = smov %s1827_s16 }
 0x2c2   : > { %p11_p5 = scmp.ge.s32.totalorder %s14_s17, 18   ;;  %s2062_s16 = smov %s2064_s18 }
 0x2c4   :  { %13 = sbr.rel (!%p11_p5) target bundleno = 2 (0x2), region = 75 }

</bundles_post_ra>
